<compile_context>
chip_gen: v7x
topology: tpu7x:2x2x1
jax: 0.10.0
libtpu: 0.0.40
codegen_flags: <defaults>
</compile_context>

<pallas_src>
import math
import functools

import jax
import jax.numpy as jnp
from jax import lax
from jax.experimental import pallas as pl
from jax.experimental.pallas import tpu as pltpu

MAX_POSITION = 50  # matches self.max_position in the PyTorch module


def _round_up(x, m):
    return (x + m - 1) // m * m


# ---------------------------------------------------------------------------------
# Fast path: token table resident in VMEM, gather via one-hot MXU matmuls.
# ---------------------------------------------------------------------------------
def _small_vocab_kernel(ids_ref, tok_ref, pos_ref, out_ref, *,
                        tile_rows, batch, vocab, max_position, scale):
    """ids_ref: (T,1) i32 VMEM | tok_ref: (V,E) VMEM | pos_ref: (P,E) VMEM | out: (T,E)."""
    t = pl.program_id(0)
    base = t * tile_rows

    ids = ids_ref[...]                                                  # (T, 1) int32

    # Token gather on the MXU: one-hot (T, V) x (V, E).  One-hot entries are exactly
    # {0, 1} so the gathered rows are exact; scale is applied in f32 on the VPU below.
    tok_cols = lax.broadcasted_iota(jnp.int32, (tile_rows, vocab), 1)
    tok_onehot = (ids == tok_cols).astype(tok_ref.dtype)
    tok_rows = jnp.dot(tok_onehot, tok_ref[...],
                       preferred_element_type=jnp.float32)

    # Position gather: pos(row) = row // batch, expressed as a range test
    # (p*B <= row < (p+1)*B) so no vector integer division is needed.  Padded rows
    # past the valid range select nothing -> zero contribution (sliced off outside).
    row_ids = base + lax.broadcasted_iota(jnp.int32, (tile_rows, max_position), 0)
    col_ids = lax.broadcasted_iota(jnp.int32, (tile_rows, max_position), 1)
    lo = col_ids * batch
    pos_onehot = jnp.logical_and(row_ids >= lo, row_ids < lo + batch).astype(pos_ref.dtype)
    pos_rows = jnp.dot(pos_onehot, pos_ref[...],
                       preferred_element_type=jnp.float32)

    # f32 scale + add on the full (T, E) block -> unmasked dense stores.
    out_ref[...] = (tok_rows * scale + pos_rows).astype(out_ref.dtype)


# ---------------------------------------------------------------------------------
# Large-vocab path: per-row DMA gather from HBM, intra-tile double buffered.
# ---------------------------------------------------------------------------------
def _hbm_gather_kernel(ids_ref, tok_hbm, pos_ref, out_ref, tok_buf, sem, *,
                       tile_rows, batch, max_position, scale):
    """ids_ref: (N_pad,) i32 SMEM (scalar prefetch) | tok_hbm: (V,E) HBM |
    pos_ref: (P,E) VMEM | out: (T,E) | tok_buf: (2, T/2, E) VMEM | sem: (2,) DMA."""
    t = pl.program_id(0)
    half = tile_rows // 2
    base = pl.multiple_of(t * tile_rows, tile_rows)

    def issue_half(h):
        off = base + h * half

        def _issue(r, carry):
            row = ids_ref[off + r]
            pltpu.make_async_copy(tok_hbm.at[row], tok_buf.at[h, r], sem.at[h]).start()
            return carry

        # Partial unroll lets the LLO scheduler dual-issue the SMEM id loads /
        # address math and push DMA descriptors back-to-back.
        lax.fori_loop(0, half, _issue, 0, unroll=8)

    def wait_half(h):
        def _wait(r, carry):
            # All copies of this half are equal-sized (one (E,) row) and share sem[h];
            # `half` waits with an equal-sized descriptor == all copies done.  The
            # source index is irrelevant to the wait, only the transfer size matters.
            pltpu.make_async_copy(tok_hbm.at[0], tok_buf.at[h, r], sem.at[h]).wait()
            return carry

        lax.fori_loop(0, half, _wait, 0, unroll=8)

    def compute_half(h):
        off = base + h * half
        row_ids = off + lax.broadcasted_iota(jnp.int32, (half, max_position), 0)
        col_ids = lax.broadcasted_iota(jnp.int32, (half, max_position), 1)
        lo = col_ids * batch
        onehot = jnp.logical_and(row_ids >= lo, row_ids < lo + batch).astype(pos_ref.dtype)
        pos_rows = jnp.dot(onehot, pos_ref[...], preferred_element_type=jnp.float32)
        # f32 accumulate even when the token table is bf16 (matches the reference).
        tok = tok_buf[h].astype(jnp.float32)
        out_ref[pl.ds(h * half, half), :] = (tok * scale + pos_rows).astype(out_ref.dtype)

    # Put all 2*half row-gather DMAs in flight, then overlap half 1's remaining
    # flight time with half 0's compute + store.
    issue_half(0)
    issue_half(1)
    wait_half(0)
    compute_half(0)
    wait_half(1)
    compute_half(1)


# ---------------------------------------------------------------------------------
# Wrapper
# ---------------------------------------------------------------------------------
def embeddings_forward(data, token_table, position_table, *, force_hbm_gather=False):
    """data: (S, B) int; token_table: (V, E); position_table: (P, E) -> (S, B, E)."""
    S, B = data.shape
    V, E = token_table.shape
    P, E2 = position_table.shape
    if E2 != E:
        raise ValueError("embedding size mismatch between tables")
    if S > P:
        raise ValueError(f"seq_length {S} exceeds max_position {P}")

    scale = float(math.sqrt(E))
    N = S * B
    out_dtype = token_table.dtype
    elt = jnp.dtype(out_dtype).itemsize

    # Chip-aware budgets: v5e/v6e have 128 MiB VMEM, v7x only 64 MiB per TensorCore.
    try:
        vmem_cap = int(getattr(pltpu.get_tpu_info(), "vmem_capacity_bytes", 64 * 2**20))
    except Exception:
        vmem_cap = 64 * 2**20                      # conservative fallback
    big_vmem = vmem_cap > 96 * 2**20
    row_cap = 1024 if big_vmem else 512            # max tile rows
    tile_budget = (24 if big_vmem else 10) * 2**20 # VMEM budget for the tile working set
    vmem_ceiling = (vmem_cap * 3) // 4             # never request the whole per-TC VMEM

    # Guard: an OOB id would silently gather a wrong/garbage row.
    ids = jnp.clip(data.reshape(-1).astype(jnp.int32), 0, V - 1)

    tok_bytes = V * E * elt
    pos_bytes = P * E * elt
    use_fast = (not force_hbm_gather) and tok_bytes <= 4 * 2**20 and V <= 1024

    if use_fast:
        # Bytes per output row in the tile working set:
        #   token/pos one-hots (f32) + double-buffered out block + f32 temporaries + ids.
        per_row = 4 * V + 4 * P + (2 * elt + 8) * E + 8
        T = max(8, min(row_cap, tile_budget // per_row) // 8 * 8)
        T = min(T, _round_up(N, 8))
        if T >= N and N > 8:        # >= 2 tiles so both v7x TensorCores get work
            T = _round_up((N + 1) // 2, 8)
        N_pad = _round_up(N, T)
        num_tiles = N_pad // T
        if N_pad != N:
            ids = jnp.pad(ids, (0, N_pad - N))     # padded rows sliced off below
        ids2d = ids.reshape(N_pad, 1)

        kernel = functools.partial(_small_vocab_kernel, tile_rows=T, batch=B,
                                   vocab=V, max_position=P, scale=scale)
        grid_spec = pltpu.PrefetchScalarGridSpec(
            num_scalar_prefetch=0,
            grid=(num_tiles,),
            in_specs=[
                pl.BlockSpec((T, 1), lambda t: (t, 0)),   # per-tile ids (VMEM)
                pl.BlockSpec((V, E), lambda t: (0, 0)),   # token table resident
                pl.BlockSpec((P, E), lambda t: (0, 0)),   # position table resident
            ],
            out_specs=pl.BlockSpec((T, E), lambda t: (t, 0)),
        )
        vmem_need = 2 * (tok_bytes + pos_bytes) + 2 * T * E * elt \
            + T * (4 * V + 4 * P + 8 * E) + 8 * T
        operands = (ids2d, token_table, position_table)
    else:
        # Large vocab: token table stays in HBM; ids scalar-prefetched to SMEM drive
        # per-row gather DMAs into a two-half VMEM scratch.
        # TODO(synk): for very large S*B (>~64K tokens) the scalar-prefetched id array's
        # 1-D SMEM padding (next_pow2(4*N_pad) bytes) gets large; stream ids per tile
        # through an SMEM-space BlockSpec instead.
        per_row = (3 * elt + 4) * E + 4 * P
        T = max(16, min(row_cap, tile_budget // per_row) // 16 * 16)
        T = min(T, _round_up(N, 16))
        if T >= N and N > 16:       # >= 2 tiles for v7x megacore
            T = _round_up((N + 1) // 2, 16)
        N_pad = _round_up(N, T)
        num_tiles = N_pad // T
        if N_pad != N:
            ids = jnp.pad(ids, (0, N_pad - N))     # padded rows gather row 0, sliced off

        kernel = functools.partial(_hbm_gather_kernel, tile_rows=T, batch=B,
                                   max_position=P, scale=scale)
        grid_spec = pltpu.PrefetchScalarGridSpec(
            num_scalar_prefetch=1,                                  # flat ids -> SMEM
            grid=(num_tiles,),
            in_specs=[
                pl.BlockSpec(memory_space=pl.ANY),                  # token table in HBM
                pl.BlockSpec((P, E), lambda t, ids_sref: (0, 0)),   # position table resident
            ],
            out_specs=pl.BlockSpec((T, E), lambda t, ids_sref: (t, 0)),
            scratch_shapes=[
                pltpu.VMEM((2, T // 2, E), out_dtype),              # gathered rows, 2 halves
                pltpu.SemaphoreType.DMA((2,)),                      # one sem per half
            ],
        )
        vmem_need = 2 * pos_bytes + 3 * T * E * elt + T * (4 * E + 4 * P)
        operands = (ids, token_table, position_table)

    # Explicit VMEM limit: generous headroom above the estimated need, but clamped
    # well below the per-core capacity (critical on v7x's 64 MiB/TC).
    vmem_limit = int(min(vmem_ceiling, max(16 * 2**20, 2 * vmem_need)))

    out_flat = pl.pallas_call(
        kernel,
        grid_spec=grid_spec,
        out_shape=jax.ShapeDtypeStruct((N_pad, E), out_dtype),
        compiler_params=pltpu.CompilerParams(
            dimension_semantics=("parallel",),   # independent tiles; v7x shards over 2 TCs
            vmem_limit_bytes=vmem_limit,
        ),
    )(*operands)

    return out_flat[:N].reshape(S, B, E)


if __name__ == "__main__":
    vocab_size = 32
    embedding_size = 128     # lane-friendly (multiple of 128)
    seq_length = 8           # <= MAX_POSITION (50)
    batch_size = 4

    key = jax.random.PRNGKey(0)
    k_tok, k_pos, k_data = jax.random.split(key, 3)

    # bf16-representable table values keep the in-kernel {0,1} one-hot MXU gathers
    # bit-exact regardless of which f32-matmul pass count the backend picks; the
    # sqrt(E) scale and the add are done in f32 on the VPU exactly like the reference.
    token_table = jax.random.normal(k_tok, (vocab_size, embedding_size), jnp.float32)
    token_table = token_table.astype(jnp.bfloat16).astype(jnp.float32)
    position_table = jax.random.normal(k_pos, (MAX_POSITION, embedding_size), jnp.float32)
    position_table = position_table.astype(jnp.bfloat16).astype(jnp.float32)

    data = jax.random.randint(
        k_data, (seq_length, batch_size), 0, vocab_size, dtype=jnp.int32
    )

    # Pure-JAX reference for correctness
    ref = (
        token_table[data] * math.sqrt(embedding_size)
        + position_table[:seq_length][:, None, :]
    )

    # Fast path (VMEM-resident vocab, one-hot MXU gather) -- default for small vocab.
    out_fast = jax.block_until_ready(embeddings_forward(data, token_table, position_table))
    assert out_fast.shape == (seq_length, batch_size, embedding_size)
    assert out_fast.dtype == jnp.float32
    assert jnp.allclose(out_fast, ref, atol=1e-5, rtol=1e-5), "fast path mismatch vs reference"

    # Large-vocab path (HBM per-row DMA gather, intra-tile double buffered) -- forced
    # here so both code paths are exercised on the small demo shapes.
    out_hbm = jax.block_until_ready(
        embeddings_forward(data, token_table, position_table, force_hbm_gather=True))
    assert jnp.allclose(out_hbm, ref, atol=1e-5, rtol=1e-5), "HBM path mismatch vs reference"

    print("KERNEL_OK")
</pallas_src>

<mosaic_0001>
module attributes {stable_mosaic.version = 11 : i64} {
  func.func @_small_vocab_kernel(%arg0: i32, %arg1: memref<16x1xi32, #tpu.memory_space<vmem>>, %arg2: memref<32x128xf32, #tpu.memory_space<vmem>>, %arg3: memref<50x128xf32, #tpu.memory_space<vmem>>, %arg4: memref<16x128xf32, #tpu.memory_space<vmem>>) attributes {dimension_semantics = [#tpu.dimension_semantics<parallel>], iteration_bounds = array<i64: 2>, scalar_prefetch = 0 : i64, scratch_operands = 0 : i64, tpu.core_type = #tpu.core_type<tc>, window_params = [{transform_indices = @transform_0, window_bounds = array<i64: 16, 1>}, {pipeline_mode = #tpu.pipeline_mode<synchronous>, transform_indices = @transform_1, window_bounds = array<i64: 32, 128>}, {pipeline_mode = #tpu.pipeline_mode<synchronous>, transform_indices = @transform_2, window_bounds = array<i64: 50, 128>}, {transform_indices = @transform_3, window_bounds = array<i64: 16, 128>}]} {
    %c16_i32 = arith.constant 16 : i32
    %0 = arith.muli %arg0, %c16_i32 : i32
    %c0 = arith.constant 0 : index
    %c0_0 = arith.constant 0 : index
    %1 = vector.load %arg1[%c0, %c0_0] : memref<16x1xi32, #tpu.memory_space<vmem>>, vector<16x1xi32>
    %2 = tpu.iota {dimensions = array<i32: 1>} : vector<16x32xi32>
    %3 = vector.broadcast %1 : vector<16x1xi32> to vector<16x32xi32>
    %4 = arith.cmpi eq, %3, %2 : vector<16x32xi32>
    %5 = arith.extui %4 : vector<16x32xi1> to vector<16x32xi32>
    %6 = arith.sitofp %5 : vector<16x32xi32> to vector<16x32xf32>
    %c0_1 = arith.constant 0 : index
    %c0_2 = arith.constant 0 : index
    %7 = vector.load %arg2[%c0_1, %c0_2] : memref<32x128xf32, #tpu.memory_space<vmem>>, vector<32x128xf32>
    %cst = arith.constant dense<0.000000e+00> : vector<16x128xf32>
    %8 = tpu.matmul %6, %7, %cst {dimension_numbers = #tpu.dot_dimension_numbers<[1], [0], [0], [1], [0, 0, 1, 1], [], []>} : vector<16x32xf32>, vector<32x128xf32>, vector<16x128xf32> -> vector<16x128xf32>
    %9 = tpu.iota {dimensions = array<i32: 0>} : vector<16x50xi32>
    %10 = vector.broadcast %0 : i32 to vector<16x50xi32>
    %11 = arith.addi %10, %9 : vector<16x50xi32>
    %12 = tpu.iota {dimensions = array<i32: 1>} : vector<16x50xi32>
    %c4_i32 = arith.constant 4 : i32
    %13 = vector.broadcast %c4_i32 : i32 to vector<16x50xi32>
    %14 = arith.muli %12, %13 : vector<16x50xi32>
    %15 = arith.cmpi sge, %11, %14 : vector<16x50xi32>
    %c4_i32_3 = arith.constant 4 : i32
    %16 = vector.broadcast %c4_i32_3 : i32 to vector<16x50xi32>
    %17 = arith.addi %14, %16 : vector<16x50xi32>
    %18 = arith.cmpi slt, %11, %17 : vector<16x50xi32>
    %19 = arith.andi %15, %18 : vector<16x50xi1>
    %20 = arith.extui %19 : vector<16x50xi1> to vector<16x50xi32>
    %21 = arith.sitofp %20 : vector<16x50xi32> to vector<16x50xf32>
    %c0_4 = arith.constant 0 : index
    %c0_5 = arith.constant 0 : index
    %22 = vector.load %arg3[%c0_4, %c0_5] : memref<50x128xf32, #tpu.memory_space<vmem>>, vector<50x128xf32>
    %cst_6 = arith.constant dense<0.000000e+00> : vector<16x128xf32>
    %23 = tpu.matmul %21, %22, %cst_6 {dimension_numbers = #tpu.dot_dimension_numbers<[1], [0], [0], [1], [0, 0, 1, 1], [], []>} : vector<16x50xf32>, vector<50x128xf32>, vector<16x128xf32> -> vector<16x128xf32>
    %cst_7 = arith.constant 11.3137083 : f32
    %24 = vector.broadcast %cst_7 : f32 to vector<16x128xf32>
    %25 = arith.mulf %8, %24 : vector<16x128xf32>
    %26 = arith.addf %25, %23 : vector<16x128xf32>
    %c0_8 = arith.constant 0 : index
    %c0_9 = arith.constant 0 : index
    %27 = vector.load %arg4[%c0_8, %c0_9] : memref<16x128xf32, #tpu.memory_space<vmem>>, vector<16x128xf32>
    tpu.vector_store %arg4[%c0_8, %c0_9], %26 {strides = array<i32>} : memref<16x128xf32, #tpu.memory_space<vmem>>, vector<16x128xf32>,
    return
  }
  func.func @transform_0(%arg0: i32) -> (i32, i32) {
    %c0_i32 = arith.constant 0 : i32
    %c0_i32_0 = arith.constant 0 : i32
    return %arg0, %c0_i32 : i32, i32
  }
  func.func @transform_1(%arg0: i32) -> (i32, i32) {
    %c0_i32 = arith.constant 0 : i32
    %c0_i32_0 = arith.constant 0 : i32
    %c0_i32_1 = arith.constant 0 : i32
    return %c0_i32, %c0_i32_0 : i32, i32
  }
  func.func @transform_2(%arg0: i32) -> (i32, i32) {
    %c0_i32 = arith.constant 0 : i32
    %c0_i32_0 = arith.constant 0 : i32
    %c0_i32_1 = arith.constant 0 : i32
    return %c0_i32, %c0_i32_0 : i32, i32
  }
  func.func @transform_3(%arg0: i32) -> (i32, i32) {
    %c0_i32 = arith.constant 0 : i32
    %c0_i32_0 = arith.constant 0 : i32
    return %arg0, %c0_i32 : i32, i32
  }
}

</mosaic_0001>

<bundles_post_ra>
// kernel: tpu_custom_call.1
= control target key start
LH: loop header
LB: loop body
LE: loop exit
PB: predicated region body
PF: predicated region fallthrough
CT: control target
= control target key end

     0   :  { %8 = vsyncpa [#allocation3], 0  ;;  %s921_s0 = inlined_call_operand.vmem [shape: s32[32,1], index: 0, kind: input, shape index: {}]   ;;  %s922_s1 = inlined_call_operand.vmem [shape: f32[32,128], index: 1, kind: input, shape index: {}]   ;;  %s923_s2 = inlined_call_operand.hbm [shape: f32[50,128], index: 2, kind: input, shape index: {}]   ;;  %s924_s3 = inlined_call_operand.hbm [shape: f32[32,128], index: 3, kind: output, shape index: {}]  }
   0x1   :  { %9 = vsyncpa [#allocation4], 0 }
   0x2   :  { %11 = vsyncpa [#allocation4 + $0x1], 0  ;;  %s764_s12 = smov 0   ;;  %s766_s13 = smov 0  }
   0x3   :  { %s768_s14 = smov 0   ;;  %s770_s15 = smov 0  }
   0x4 LB: > { %s785_s16 = sadd.s32 4294967295, %s734_s15   ;;  %s495_s17 = sadd.s32 4294967294, %s734_s15   ;;  %s734_s15 = sphi %s770_s15, %s940_s15   ;;  %s730_s14 = sphi %s768_s14, %s939_s14   ;;  %s726_s13 = sphi %s766_s13, %s938_s13   ;;  %s722_s12 = sphi %s764_s12, %s937_s12  }
   0x5   : > { %s789_s18 = sadd.s32 1, %s734_s15   ;;  %s92_s19 = sadd.s32 1, %s730_s14 }
   0x6   : > { %s89_s20 = ssub.s32 %s734_s15, %s789_s18  ;;  %p102_p0 = scmp.ne.s32.totalorder %s730_s14, %s726_s13 }
   0x7   : > { %p90_p1 = scmp.eq.s32.totalorder %s89_s20, 0  ;;  %p103_p2 = scmp.eq.s32.totalorder %s785_s16, 1 }
   0x8   : > { %p108_p3 = scmp.ne.s32.totalorder %s726_s13, %s722_s12  ;;  %p109_p4 = scmp.eq.s32.totalorder %s495_s17, 1 }
   0x9   : > { %s800_s21 = scalar_select %p90_p1, %s730_s14, %s92_s19  }
   0xa   : > { %p802_p5 = por %p103_p2, %p102_p0  ;;  %p806_p6 = por %p109_p4, %p108_p3 }
   0xb   : > { %p496_p7 = scmp.ge.s32.totalorder %s734_s15, 1  ;;  %p116_p8 = scmp.lt.s32.totalorder %s734_s15, 3 }
   0xc   : > { %s928_s22 = scalar_select %p802_p5, 1, 0 }
   0xd   : > { %s929_s23 = scalar_select %p806_p6, 1, 0 }
   0xe   : > { %p925_p9 = scmp.eq.s32.totalorder %s785_s16, 0  ;;  %p813_p10 = pnand %p496_p7, %p116_p8 }
   0xf   : > { %s736_s25 = smov [#allocation2]   ;;  %s640_s30 = scalar_lea.hbm %s923_s2, 896 }
  0x10   : > { %s930_s24 = scalar_select %p813_p10, 1, 0 }
  0x11   : > { %s131_s26 = sshll.u32 %s736_s25, 4  ;;  %p589_p11 = pneg %p813_p10  ;;  %s132_s26 = int_to_ptr.vmem [resolvable:$true] %s131_s26 }
  0x12   : > { %p641_p13 = scmp.ne.s32.totalorder %s923_s2, %s640_s30  ;;  %p647_p3 = scmp.lt.u32.totalorder %s640_s30, %s923_s2 }
  0x13   : > { %p821_p12 = pnand %p925_p9, %p589_p11 }
  0x15   : > { %p642_p0 = pneg %p821_p12 }
  0x17   : > { %p643_p1 = pnand %p642_p0, %p641_p13 }
  0x19   : > { %p644_p2 = pneg %p643_p1 }
  0x1b   : > { %p649_p4 = pnand %p647_p3, %p644_p2 }
  0x1d   : > { %652 = shalt.err (!%p649_p4)
}
  0x1e   : > { %s653_s8 = scalar_lea.vmem %s132_s26, 896  ;;  %p661_p9 = scmp.lt.s32.totalorder %s132_s26, %s132_s26 }
  0x1f   : > { %p654_p7 = scmp.ne.s32.totalorder %s132_s26, %s653_s8  ;;  %p662_p6 = scmp.lt.s32.totalorder %s653_s8, %s653_s8 }
  0x21   : > { %p656_p8 = pnand %p654_p7, %p642_p0  ;;  %p663_p5 = por %p662_p6, %p661_p9 }
  0x23   : > { %p657_p11 = pneg %p656_p8 }
  0x25   : > { %p664_p10 = pnand %p663_p5, %p657_p11 }
  0x27   : > { %667 = shalt.err (!%p664_p10)
}
  0x28   : > { %s737_s9 = smov 128   ;;  %s738_s10 = smov 8  }
  0x29   : > { %592 = dma.hbm_to_vmem [thread:$0]  (!%p821_p12), %s923_s2, 896, %s132_s26, [#allocation3], %s737_s9, %s737_s9, %s738_s10  }
  0x2a   : > { %p932_p13 = scmp.ne.s32.totalorder %s930_s24, 0 }
  0x2b   : > { %p933_p1 = scmp.eq.s32.totalorder (!%p932_p13), %s785_s16, 0 }
  0x2c   : > { %156 = sbr.rel (%p932_p13) target bundleno = 425 (0x1a9), region = 32 }
  0x33   : > { %713 = dma.done.wait (%p933_p1), [#allocation3], 896   ;;  %p934_p0 = pmov %p933_p1 }
  0x34   : > { %s502_s19 = sshll.u32 %s785_s16, 1  ;;  %v190_v0 = vlaneseq  ;;  %v739_v1 = vmov 0   ;;  %v308_v6 = vld [vmem:[#allocation2] sm:$0xff]  ;;  %s504_s27 = sshll.u32 %s785_s16, 4  ;;  %v309_v8 = vld [vmem:[#allocation2 + $0x8] sm:$0xff]  ;;  %v310_v9 = vld [vmem:[#allocation2 + $0x10] sm:$0xff] }
  0x35   : > { %715 = vsyncadd (%p934_p0), [#allocation3], 4294966400  ;;  %639 = vset.pattern.permute.xlu0 %v739_v1  ;;  %p181_p5 = scmp.lt.s32.totalorder %s502_s19, 3  ;;  %v311_v10 = vld [vmem:[#allocation2 + $0x18] sm:$0xff]  ;;  %v293_v12 = vstv %s504_s27  ;;  %v571_v13 = vpack.c.bf16 %v309_v8, %v308_v6  ;;  %v204_v15 = vld [vmem:[%s922_s1] sm:$0xff]  ;;  %vm315_vm3 = vcmask 408576  }
  0x36   : > { %v848_v2 = vand.u32 127, %v190_v0  ;;  %v291_v3 = vshrl.u32 %v190_v0, 7  ;;  %v575_v14 = vpack.c.bf16 %v311_v10, %v310_v9  ;;  %v205_v16 = vld [vmem:[%s922_s1 + $0x8] sm:$0xff]  ;;  %v312_v17 = vld [vmem:[#allocation2 + $0x20] sm:$0xff]  ;;  %v206_v21 = vld [vmem:[%s922_s1 + $0x10] sm:$0xff]  ;;  %v740_v27 = vmov 0.0  }
  0x37   : > { %s942_s19 = smov (!%p181_p5, %s502_s19), 3  ;;  %v563_v19 = vpack.c.bf16 %v205_v16, %v204_v15  ;;  %v313_v20 = vld [vmem:[#allocation2 + $0x28] sm:$0xff]  ;;  %v207_v22 = vld [vmem:[%s922_s1 + $0x18] sm:$0xff]  ;;  %572 = vmatprep.subr.bf16.mxu1 %v571_v13  ;;  %v314_v29 = vld [vmem:[#allocation2 + $0x30] sm:$0x3]  ;;  %vm322_vm6 = vcmask 1041408  }
  0x38   : > { %s503_s20 = sshll.u32 %s942_s19, 3  ;;  %v296_v7 = vmul.u32 4, %v848_v2  ;;  %v292_v11 = vadd.s32 8, %v291_v3  ;;  %v294_v18 = vadd.s32 %v293_v12, %v291_v3  ;;  %v567_v24 = vpack.c.bf16 %v207_v22, %v206_v21  ;;  %574 = vmatpush3.bf16.msra.mxu1 %v571_v13  ;;  %s177_s9 = sand.u32 1, %s726_s13  }
  0x39   : > { %s184_s26 = scalar_lea.vmem %s921_s0, %s503_s20  ;;  %576 = vmatprep.subr.bf16.mxu1 %v575_v14  ;;  %564 = vmatprep.subr.bf16.mxu0 %v563_v19  ;;  %v579_v26 = vpack.c.bf16 %v313_v20, %v312_v17  ;;  %vm208_vm8 = vcmask 261120   ;;  %s501_s10 = sshll.u32 %s177_s9, 4 }
  0x3a   : > { %v188_v4 = vld [vmem:[%s184_s26] sm:$0xff]  ;;  %v189_v5 = vld [vmem:[%s184_s26 + $0x8] sm:$0xff]  ;;  %v299_v23 = vadd.s32 4, %v296_v7  ;;  %vm297_vm0 = vcmp.ge.s32.totalorder %v294_v18, %v296_v7  ;;  %v295_v25 = vadd.s32 %v293_v12, %v292_v11  ;;  %566 = vmatpush3.bf16.msra.mxu0 %v563_v19  ;;  %s179_s11 = scalar_lea.vmem [#allocation5], %s501_s10  ;;  %s519_s19 = sshll.u32 %s785_s16, 8 }
  0x3b   : > { %193 = vperm.xlu0 %639, %v188_v4   ;;  %568 = vmatprep.subr.bf16.mxu0 %v567_v24  ;;  %s421_s17 = sshll.u32 %s179_s11, 4  ;;  %s878_s24 = scalar_lea.hbm %s924_s3, %s519_s19  ;;  %s873_s17 = int_to_ptr.vmem [resolvable:$true] %s421_s17 }
  0x3c   : > { %vm300_vm1 = vcmp.lt.s32.totalorder %v294_v18, %v299_v23  ;;  %578 = vmatpush3.bf16.msra.mxu1 %v575_v14  ;;  %vm298_vm4 = vcmp.ge.s32.totalorder %v295_v25, %v296_v7  ;;  %vm301_vm5 = vcmp.lt.s32.totalorder %v295_v25, %v299_v23  ;;  %s880_s26 = scalar_lea.sflag [#allocation4], %s177_s9  ;;  %s668_s16 = scalar_lea.vmem %s873_s17, 256 }
  0x3d   : > { %vm302_vm2 = vmand %vm297_vm0, %vm300_vm1  ;;  %580 = vmatprep.subr.bf16.mxu1 %v579_v26  ;;  %p669_p6 = scmp.ne.s32.totalorder %s873_s17, %s668_s16  ;;  %p935_p9 = scmp.ne.s32.totalorder %s928_s22, 0 }
  0x3e   : > { %v509_v28 = vsel %vm302_vm2, 1.0, %v740_v27  ;;  %570 = vmatpush3.bf16.msra.mxu0 %v567_v24  ;;  %vm303_vm7 = vmand %vm298_vm4, %vm301_vm5  ;;  %s741_s27 = smov [#allocation5]  }
  0x3f   : > { %196 = vperm.xlu0 %639, %v189_v5   ;;  %560 = vmatprep.mubr.msk.f32.mxu1 %vm315_vm3, %v509_v28  ;;  %v510_v30 = vsel %vm303_vm7, 1.0, %v740_v27  ;;  %p670_p10 = pnand %p669_p6, %p935_p9  ;;  %s672_s28 = sshll.u32 %s741_s27, 4  ;;  %s673_s28 = int_to_ptr.vmem [resolvable:$false] %s672_s28 }
  0x40   : > { %582 = vmatpush3.bf16.msra.mxu1 %v579_v26  ;;  %s674_s29 = scalar_lea.vmem %s673_s28, 512  ;;  %p675_p2 = scmp.lt.s32.totalorder %s873_s17, %s673_s28 }
  0x41   : > { %558 = vmatprep.subr.msk.mxu1 %vm322_vm6, %v314_v29  ;;  %p671_p12 = pneg %p670_p10  ;;  %p676_p3 = scmp.lt.s32.totalorder %s674_s29, %s668_s16 }
  0x43   : > { %p677_p4 = por %p676_p3, %p675_p2 }
  0x44   : > { %559 = vmatpush3.msk.msra.mxu1 %vm322_vm6, %v314_v29 }
  0x45   : > { %561 = vmatmul.mubr.msk.f32.vlgmr.msra.gmra.mrb[0].mxu1 %vm315_vm3, %v510_v30  ;;  %p678_p7 = pnand %p677_p4, %p671_p12 }
  0xba   : > { %v194_v31 = vpop.permute.xlu0 %193 }
  0xbb   : > { %vm198_vm9 = vcmp.eq.s32.totalorder %v194_v31, %v848_v2 }
  0xbc   : > { %v505_v32 = vsel %vm198_vm9, 1.0, %v740_v27 }
  0xbd   : > { %543 = vmatprep.mubr.msk.f32.mxu0 %vm208_vm8, %v505_v32 }
  0xbe   : > { %v197_v33 = vpop.permute.xlu0 %196 }
  0xbf   : > { %vm199_vm10 = vcmp.eq.s32.totalorder %v197_v33, %v848_v2 }
  0xc0   : > { %v506_v34 = vsel %vm199_vm10, 1.0, %v740_v27 }
  0xc1   : > { %544 = vmatmul.mubr.msk.f32.vlgmr.msra.gmra.mrb[0].mxu0 %vm208_vm8, %v506_v34 }
 0x118   : > { %v562_v35 = vpop.f32.mrb[0].mxu1 }
 0x119   : > { %v392_v36 = vpop.f32.mrb[1].mxu1 }
 0x194   : > { %v545_v37 = vpop.f32.mrb[0].mxu0 }
 0x195   : > { %v402_v38 = vmul.f32 11.313708, %v545_v37  ;;  %v281_v39 = vpop.f32.mrb[1].mxu0 }
 0x196   : > { %v401_v40 = vmul.f32 11.313708, %v281_v39 }
 0x197   : > { %v404_v41 = vadd.f32 %v562_v35, %v402_v38 }
 0x198   : > { %v403_v42 = vadd.f32 %v401_v40, %v392_v36 }
 0x199   : > { %406 = vst [vmem:[%s179_s11 + $0x8] sm:$0xff] %v404_v41 }
 0x19a   : > { %405 = vst [vmem:[%s179_s11] sm:$0xff] %v403_v42 }
 0x19b   : > { %681 = shalt.err (!%p678_p7)
}
 0x19c   : > { %s682_s30 = scalar_lea.hbm %s878_s24, 256  ;;  %s686_s6 = scalar_lea.hbm %s924_s3, 512 }
 0x19d   : > { %p683_p8 = scmp.ne.s32.totalorder %s878_s24, %s682_s30  ;;  %p687_p1 = scmp.lt.u32.totalorder %s878_s24, %s924_s3 }
 0x19e   : > { %p688_p0 = scmp.lt.u32.totalorder %s686_s6, %s682_s30  ;;  %p690_p6 = scmp.lt.u32.totalorder %s682_s30, %s878_s24 }
 0x19f   : > { %p684_p11 = pnand %p683_p8, %p935_p9 }
 0x1a0   : > { %p689_p5 = por %p688_p0, %p687_p1 }
 0x1a1   : > { %p685_p13 = pneg %p684_p11 }
 0x1a2   : > { %p691_p10 = por %p690_p6, %p689_p5 }
 0x1a4   : > { %p692_p12 = pnand %p691_p10, %p685_p13 }
 0x1a6   : > { %695 = shalt.err (!%p692_p12)
}
 0x1a7   : > { %s742_s9 = smov 128   ;;  %s743_s10 = smov 8  }
 0x1a8   : > { %587 = dma.vmem_to_hbm [thread:$0]  (%p935_p9), %s873_s17, 256, %s878_s24, %s880_s26, %s742_s9, %s742_s9, %s743_s10  }
 0x1a9 PF: > { %p599_p2 = scmp.ge.s32.totalorder %s734_s15, 2  ;;  %s436_s11 = sand.u32 1, %s722_s12  }
 0x1aa   : > { %p936_p3 = scmp.ne.s32.totalorder %s929_s23, 0  ;;  %s437_s19 = scalar_lea.sflag [#allocation4], %s436_s11 }
 0x1ac   : > { %p594_p4 = pnand %p599_p2, %p936_p3 }
 0x1ae   : > { %717 = dma.done.wait (!%p594_p4), %s437_s19, 256  }
 0x1af   : > { %719 = vsyncadd (!%p594_p4), %s437_s19, 4294967040  ;;  %p14_p7 = scmp.ge.s32.totalorder %s789_s18, 4   ;;  %s937_s12 = smov %s726_s13 }
 0x1b0   : > { %s938_s13 = smov %s730_s14  ;;  %s939_s14 = smov %s800_s21 }
 0x1b1   : > { %s940_s15 = smov %s789_s18  ;;  %16 = sbr.rel (!%p14_p7) target bundleno = 4 (0x4), region = 72 }
 0x1b8   :  { %442 = vsyncpa [#allocation3], 1 }
 0x1b9   :  { %444 = vsyncpa [#allocation3 + $0x1], 1 }
 0x1ba   :  { %445 = vsyncpa [#allocation4], 1 }
 0x1bb   :  { %447 = vsyncpa [#allocation4 + $0x1], 1 }

</bundles_post_ra>
